<compile_context>
chip_gen: v7x
topology: tpu7x:2x2x1
jax: 0.10.0
libtpu: 0.0.40
codegen_flags: <defaults>
</compile_context>

<pallas_src>
import functools

import jax
import jax.numpy as jnp
from jax.experimental import pallas as pl
from jax.experimental.pallas import tpu as pltpu

_LANES = 128


def _round_up(x, m):
    return -(-x // m) * m


def _subpixel_ce_kernel(sims_ref, gt_ref, ent_ref, cnt_ref, *,
                        inv_diversity, half_inv_diversity, disparity_step,
                        hw, tile_pixels, tiles_per_core, num_tiles,
                        factor_laplace):
    pi = pl.program_id(2)          # pixel-tile index within this core's share

    # Zero the per-(batch, core) resident accumulators on the first pixel-tile.
    @pl.when(pi == 0)
    def _():
        ent_ref[...] = jnp.zeros_like(ent_ref)
        cnt_ref[...] = jnp.zeros_like(cnt_ref)

    # Logical pixel-tile handled this step.  The index_map clamps the DMA to a
    # real tile; any duplicated (overflow) tile is fully masked out below.
    tile = pl.program_id(1) * tiles_per_core + pi

    sims = sims_ref[...].astype(jnp.float32)       # (D, TP)
    gt = gt_ref[...].astype(jnp.float32)           # (1, TP)

    # Numerically stable log-softmax pieces over the disparity axis (sublanes).
    m = jnp.max(sims, axis=0, keepdims=True)                         # (1, TP)
    shifted = sims - m                                               # (D, TP)
    lse = jnp.log(jnp.sum(jnp.exp(shifted), axis=0, keepdims=True))  # (1, TP)

    d = sims.shape[0]
    disp = (jax.lax.broadcasted_iota(jnp.int32, (d, 1), 0).astype(jnp.float32)
            * jnp.float32(disparity_step))                           # (D, 1)

    if factor_laplace:
        # exp(-|gt-disp|/div) = exp(-gt/div)*exp(+disp/div)  if disp <= gt
        #                     = exp(+gt/div)*exp(-disp/div)  otherwise.
        # 2 EUP exps per pixel instead of D; the (D,1) factors are loop constants.
        # Safe because (D-1)*step/div <= 80 (checked statically in the wrapper),
        # and the overflowing branch is never *selected* for large/inf gt.
        ed_pos = jnp.exp(disp * jnp.float32(inv_diversity))          # (D, 1)
        ed_neg = jnp.exp(-disp * jnp.float32(inv_diversity))         # (D, 1)
        eg_neg = jnp.exp(-gt * jnp.float32(inv_diversity))           # (1, TP)
        eg_pos = jnp.exp(gt * jnp.float32(inv_diversity))            # (1, TP)
        p_t = (jnp.where(disp <= gt, eg_neg * ed_pos, eg_pos * ed_neg)
               * jnp.float32(half_inv_diversity))                    # (D, TP)
    else:
        # gt == +inf (unknown / garbage tail) gives exp(-inf) = 0 everywhere.
        p_t = (jnp.exp(-jnp.abs(gt - disp) * jnp.float32(inv_diversity))
               * jnp.float32(half_inv_diversity))                    # (D, TP)

    sum_pt = jnp.sum(p_t, axis=0, keepdims=True)                     # (1, TP)
    # sum(P_t * log_p) = sum(P_t * shifted) - lse * sum(P_t): log_p is never
    # materialized (saves a full (D, TP) VPU pass and a live temporary).
    sum_pt_shift = jnp.sum(p_t * shifted, axis=0, keepdims=True)     # (1, TP)

    # Validity: known gt, pixel inside the (un-padded) image, real tile.
    px = (tile * tile_pixels
          + jax.lax.broadcasted_iota(jnp.int32, gt.shape, 1))        # (1, TP)
    valid = (gt != jnp.inf) & (px < hw) & (tile < num_tiles)

    # Guard the denominator on invalid lanes (sum_pt == 0 / garbage) to avoid
    # NaN; jnp.where *selects*, so NaN in the dead branch never propagates.
    denom = jnp.where(valid, sum_pt, jnp.float32(1.0))
    entropy = lse - sum_pt_shift / denom                             # (1, TP)

    ent_ref[...] += jnp.where(valid, entropy, jnp.float32(0.0))
    cnt_ref[...] += valid.astype(jnp.float32)


def subpixel_cross_entropy(similarities, ground_truth_disparities,
                           diversity=1.0, disparity_step=2,
                           tile_pixels=None,
                           vmem_block_budget_bytes=20 * 1024 * 1024):
    """Pallas implementation of SubpixelCrossEntropy.forward (weights=None)."""
    # TODO(synk): optional `weights` argument (weighted-mean path) not implemented.
    b, d, h, w = similarities.shape
    hw = h * w

    sims = similarities.reshape(b, d, hw)             # free reshape, no HBM pass
    gt = ground_truth_disparities.reshape(b, 1, hw)

    in_itemsize = similarities.dtype.itemsize
    gt_itemsize = ground_truth_disparities.dtype.itemsize

    # --- adaptive lane-dense pixel tile (accounts for sublane padding) -------
    def _padded_row_bytes(rows, itemsize):
        mult = 8 * max(1, 4 // itemsize)              # 8 rows (32-bit), 16 (16-bit)
        return _round_up(max(rows, mult), mult) * itemsize

    per_px = (2 * _padded_row_bytes(d, in_itemsize)       # sims, double-buffered
              + 2 * _padded_row_bytes(1, gt_itemsize)     # gt,   double-buffered
              + 2 * 2 * _padded_row_bytes(1, 4))          # 2 f32 accumulators
    if tile_pixels is None:
        tp = (vmem_block_budget_bytes // per_px) // _LANES * _LANES
    else:
        tp = _round_up(int(tile_pixels), _LANES)
    tp = max(_LANES, min(tp, _round_up(hw, _LANES)))

    num_tiles = -(-hw // tp)
    # v7x: split the pixel tiles over a second "parallel" axis so both
    # TensorCores stay busy even at batch=1.  Each (batch, core) pair owns its
    # own accumulator row; harmless extra loop level on single-TC chips.
    ncs = 2 if num_tiles >= 2 else 1
    tiles_per_core = -(-num_tiles // ncs)
    grid = (b, ncs, tiles_per_core)

    kernel = functools.partial(
        _subpixel_ce_kernel,
        inv_diversity=1.0 / float(diversity),
        half_inv_diversity=1.0 / (2.0 * float(diversity)),
        disparity_step=float(disparity_step),
        hw=hw, tile_pixels=tp, tiles_per_core=tiles_per_core,
        num_tiles=num_tiles,
        factor_laplace=((d - 1) * float(disparity_step) / float(diversity)
                        <= 80.0))

    def _tile_idx(bi, ci, pi):
        # Clamp so the DMA never targets a fully out-of-range block; the kernel
        # masks the (at most one per core) duplicated tile via `tile < num_tiles`.
        return jnp.minimum(ci * tiles_per_core + pi, num_tiles - 1)

    cost = pl.CostEstimate(
        flops=int(b * hw * (10 * d + 10)),
        transcendentals=int(b * hw * (d + 3)),
        bytes_accessed=int(sims.size * in_itemsize + gt.size * gt_itemsize
                           + 2 * b * ncs * tp * 4))

    ent_part, cnt_part = pl.pallas_call(
        kernel,
        out_shape=(jax.ShapeDtypeStruct((b, ncs, tp), jnp.float32),
                   jax.ShapeDtypeStruct((b, ncs, tp), jnp.float32)),
        grid=grid,
        in_specs=[
            pl.BlockSpec((None, d, tp),
                         lambda bi, ci, pi: (bi, 0, _tile_idx(bi, ci, pi))),
            pl.BlockSpec((None, 1, tp),
                         lambda bi, ci, pi: (bi, 0, _tile_idx(bi, ci, pi))),
        ],
        out_specs=(
            pl.BlockSpec((None, 1, tp), lambda bi, ci, pi: (bi, ci, 0)),
            pl.BlockSpec((None, 1, tp), lambda bi, ci, pi: (bi, ci, 0)),
        ),
        compiler_params=pltpu.CompilerParams(
            dimension_semantics=("parallel", "parallel", "arbitrary"),
            # Raise v5e's 16 MiB scoped default; stay well under v7x's 64 MiB.
            vmem_limit_bytes=40 * 1024 * 1024),
        cost_estimate=cost,
    )(sims, gt)

    # Tiny final cross-lane reduction + mean in the wrapper.
    return jnp.sum(ent_part) / jnp.sum(cnt_part)


def _reference(similarities, gt, diversity=1.0, disparity_step=2):
    similarities = similarities.astype(jnp.float32)
    gt = gt.astype(jnp.float32)
    d = similarities.shape[1]
    known = gt != jnp.inf
    log_p = jax.nn.log_softmax(similarities, axis=1)
    disp = (jnp.arange(d, dtype=jnp.float32)
            * float(disparity_step))[None, :, None, None]
    p_t = jnp.exp(-jnp.abs(gt[:, None] - disp) / diversity) / (2.0 * diversity)
    sum_pt = jnp.sum(p_t, axis=1)
    sum_ptlp = jnp.sum(p_t * log_p, axis=1)
    entropy = -sum_ptlp / jnp.where(known, sum_pt, 1.0)
    return jnp.sum(jnp.where(known, entropy, 0.0)) / jnp.sum(known)


if __name__ == "__main__":
    key = jax.random.PRNGKey(0)
    k1, k2, k3 = jax.random.split(key, 3)
    b, d, h, w = 2, 4, 16, 16          # batch=2, disparity channels=4, 16x16

    similarities = jax.random.normal(k1, (b, d, h, w), jnp.float32)
    # Ground-truth disparities in the covered range [0, (d-1)*step], with ~30%
    # unknown pixels marked +inf (exactly how the PyTorch module flags them).
    gt = jax.random.uniform(k2, (b, h, w), jnp.float32, 0.0, (d - 1) * 2.0)
    unknown = jax.random.uniform(k3, (b, h, w)) < 0.3
    gt = jnp.where(unknown, jnp.inf, gt)

    # 1) Main check.
    loss = jax.block_until_ready(
        subpixel_cross_entropy(similarities, gt, diversity=1.0, disparity_step=2))
    ref = _reference(similarities, gt, 1.0, 2)
    assert jnp.isfinite(loss), loss
    assert jnp.allclose(loss, ref, rtol=1e-4, atol=1e-5), (loss, ref)

    # 2) Ragged H*W with a forced small tile: exercises the in-kernel tail
    #    masking (no wrapper pad), the dual-core pixel split and the clamped
    #    duplicate tile.
    b2, h2, w2 = 1, 13, 21
    kk = jax.random.split(jax.random.PRNGKey(1), 3)
    sims2 = jax.random.normal(kk[0], (b2, d, h2, w2), jnp.float32)
    gt2 = jax.random.uniform(kk[1], (b2, h2, w2), jnp.float32, 0.0, (d - 1) * 2.0)
    gt2 = jnp.where(jax.random.uniform(kk[2], (b2, h2, w2)) < 0.3, jnp.inf, gt2)
    loss2 = jax.block_until_ready(
        subpixel_cross_entropy(sims2, gt2, diversity=0.7, disparity_step=2,
                               tile_pixels=128))
    ref2 = _reference(sims2, gt2, 0.7, 2)
    assert jnp.allclose(loss2, ref2, rtol=1e-4, atol=1e-5), (loss2, ref2)

    # 3) bf16 similarities (the recommended input dtype — halves HBM traffic);
    #    the kernel casts to f32 internally for the reductions.
    sims_bf16 = similarities.astype(jnp.bfloat16)
    loss3 = jax.block_until_ready(
        subpixel_cross_entropy(sims_bf16, gt, diversity=1.0, disparity_step=2))
    ref3 = _reference(sims_bf16, gt, 1.0, 2)
    assert jnp.allclose(loss3, ref3, rtol=1e-3, atol=1e-4), (loss3, ref3)

    print("KERNEL_OK")
</pallas_src>

<mosaic_0001>
module attributes {stable_mosaic.version = 11 : i64} {
  func.func @_subpixel_ce_kernel(%arg0: i32, %arg1: i32, %arg2: i32, %arg3: memref<1x4x256xf32, #tpu.memory_space<vmem>>, %arg4: memref<1x1x256xf32, #tpu.memory_space<vmem>>, %arg5: memref<1x1x256xf32, #tpu.memory_space<vmem>>, %arg6: memref<1x1x256xf32, #tpu.memory_space<vmem>>) attributes {dimension_semantics = [#tpu.dimension_semantics<parallel>, #tpu.dimension_semantics<parallel>, #tpu.dimension_semantics<arbitrary>], iteration_bounds = array<i64: 2, 1, 1>, scalar_prefetch = 0 : i64, scratch_operands = 0 : i64, tpu.core_type = #tpu.core_type<tc>, window_params = [{transform_indices = @transform_0, window_bounds = array<i64: 1, 4, 256>}, {transform_indices = @transform_1, window_bounds = array<i64: 1, 1, 256>}, {transform_indices = @transform_2, window_bounds = array<i64: 1, 1, 256>}, {transform_indices = @transform_3, window_bounds = array<i64: 1, 1, 256>}]} {
    %c0_i32 = arith.constant 0 : i32
    %0 = arith.cmpi eq, %arg2, %c0_i32 : i32
    %1 = arith.extui %0 : i1 to i32
    %c0_i32_0 = arith.constant 0 : i32
    %2 = arith.cmpi ne, %1, %c0_i32_0 : i32
    scf.if %2 {
      %cst_34 = arith.constant 0.000000e+00 : f32
      %86 = vector.broadcast %cst_34 : f32 to vector<1x256xf32>
      %c0_35 = arith.constant 0 : index
      %c0_36 = arith.constant 0 : index
      %c0_37 = arith.constant 0 : index
      %87 = vector.load %arg5[%c0_35, %c0_36, %c0_37] : memref<1x1x256xf32, #tpu.memory_space<vmem>>, vector<1x1x256xf32>
      %88 = vector.shape_cast %87 : vector<1x1x256xf32> to vector<1x256xf32>
      %89 = vector.shape_cast %86 : vector<1x256xf32> to vector<1x1x256xf32>
      tpu.vector_store %arg5[%c0_35, %c0_36, %c0_37], %89 {strides = array<i32>} : memref<1x1x256xf32, #tpu.memory_space<vmem>>, vector<1x1x256xf32>,
      %cst_38 = arith.constant 0.000000e+00 : f32
      %90 = vector.broadcast %cst_38 : f32 to vector<1x256xf32>
      %c0_39 = arith.constant 0 : index
      %c0_40 = arith.constant 0 : index
      %c0_41 = arith.constant 0 : index
      %91 = vector.load %arg6[%c0_39, %c0_40, %c0_41] : memref<1x1x256xf32, #tpu.memory_space<vmem>>, vector<1x1x256xf32>
      %92 = vector.shape_cast %91 : vector<1x1x256xf32> to vector<1x256xf32>
      %93 = vector.shape_cast %90 : vector<1x256xf32> to vector<1x1x256xf32>
      tpu.vector_store %arg6[%c0_39, %c0_40, %c0_41], %93 {strides = array<i32>} : memref<1x1x256xf32, #tpu.memory_space<vmem>>, vector<1x1x256xf32>,
    } else {
    }
    %c1_i32 = arith.constant 1 : i32
    %3 = arith.muli %arg1, %c1_i32 : i32
    %4 = arith.addi %3, %arg2 : i32
    %c0 = arith.constant 0 : index
    %c0_1 = arith.constant 0 : index
    %c0_2 = arith.constant 0 : index
    %5 = vector.load %arg3[%c0, %c0_1, %c0_2] : memref<1x4x256xf32, #tpu.memory_space<vmem>>, vector<1x4x256xf32>
    %6 = vector.shape_cast %5 : vector<1x4x256xf32> to vector<4x256xf32>
    %c0_3 = arith.constant 0 : index
    %c0_4 = arith.constant 0 : index
    %c0_5 = arith.constant 0 : index
    %7 = vector.load %arg4[%c0_3, %c0_4, %c0_5] : memref<1x1x256xf32, #tpu.memory_space<vmem>>, vector<1x1x256xf32>
    %8 = vector.shape_cast %7 : vector<1x1x256xf32> to vector<1x256xf32>
    %cst = arith.constant dense<0xFF800000> : vector<256xf32>
    %9 = vector.multi_reduction <maximumf>, %6, %cst [0] : vector<4x256xf32> to vector<256xf32>
    %10 = vector.shape_cast %9 : vector<256xf32> to vector<1x256xf32>
    %11 = vector.broadcast %10 : vector<1x256xf32> to vector<4x256xf32>
    %12 = arith.subf %6, %11 : vector<4x256xf32>
    %13 = math.exp %12 : vector<4x256xf32>
    %cst_6 = arith.constant dense<0.000000e+00> : vector<256xf32>
    %14 = vector.multi_reduction <add>, %13, %cst_6 [0] : vector<4x256xf32> to vector<256xf32>
    %15 = vector.shape_cast %14 : vector<256xf32> to vector<1x256xf32>
    %16 = math.log %15 : vector<1x256xf32>
    %17 = tpu.iota {dimensions = array<i32: 0>} : vector<4x1xi32>
    %18 = arith.sitofp %17 : vector<4x1xi32> to vector<4x1xf32>
    %cst_7 = arith.constant 2.000000e+00 : f32
    %19 = vector.broadcast %cst_7 : f32 to vector<4x1xf32>
    %20 = arith.mulf %18, %19 : vector<4x1xf32>
    %cst_8 = arith.constant 1.000000e+00 : f32
    %21 = vector.broadcast %cst_8 : f32 to vector<4x1xf32>
    %22 = arith.mulf %20, %21 : vector<4x1xf32>
    %23 = math.exp %22 : vector<4x1xf32>
    %cst_9 = arith.constant 0.000000e+00 : f32
    %24 = vector.broadcast %cst_9 : f32 to vector<4x1xf32>
    %25 = arith.subf %24, %20 : vector<4x1xf32>
    %cst_10 = arith.constant 1.000000e+00 : f32
    %26 = vector.broadcast %cst_10 : f32 to vector<4x1xf32>
    %27 = arith.mulf %25, %26 : vector<4x1xf32>
    %28 = math.exp %27 : vector<4x1xf32>
    %cst_11 = arith.constant 0.000000e+00 : f32
    %29 = vector.broadcast %cst_11 : f32 to vector<1x256xf32>
    %30 = arith.subf %29, %8 : vector<1x256xf32>
    %cst_12 = arith.constant 1.000000e+00 : f32
    %31 = vector.broadcast %cst_12 : f32 to vector<1x256xf32>
    %32 = arith.mulf %30, %31 : vector<1x256xf32>
    %33 = math.exp %32 : vector<1x256xf32>
    %cst_13 = arith.constant 1.000000e+00 : f32
    %34 = vector.broadcast %cst_13 : f32 to vector<1x256xf32>
    %35 = arith.mulf %8, %34 : vector<1x256xf32>
    %36 = math.exp %35 : vector<1x256xf32>
    %37 = vector.broadcast %20 : vector<4x1xf32> to vector<4x256xf32>
    %38 = vector.broadcast %8 : vector<1x256xf32> to vector<4x256xf32>
    %39 = arith.cmpf ole, %37, %38 : vector<4x256xf32>
    %40 = vector.broadcast %33 : vector<1x256xf32> to vector<4x256xf32>
    %41 = vector.broadcast %23 : vector<4x1xf32> to vector<4x256xf32>
    %42 = arith.mulf %40, %41 : vector<4x256xf32>
    %43 = vector.broadcast %36 : vector<1x256xf32> to vector<4x256xf32>
    %44 = vector.broadcast %28 : vector<4x1xf32> to vector<4x256xf32>
    %45 = arith.mulf %43, %44 : vector<4x256xf32>
    %46 = arith.select %39, %42, %45 : vector<4x256xi1>, vector<4x256xf32>
    %cst_14 = arith.constant 5.000000e-01 : f32
    %47 = vector.broadcast %cst_14 : f32 to vector<4x256xf32>
    %48 = arith.mulf %46, %47 : vector<4x256xf32>
    %cst_15 = arith.constant dense<0.000000e+00> : vector<256xf32>
    %49 = vector.multi_reduction <add>, %48, %cst_15 [0] : vector<4x256xf32> to vector<256xf32>
    %50 = vector.shape_cast %49 : vector<256xf32> to vector<1x256xf32>
    %51 = arith.mulf %48, %12 : vector<4x256xf32>
    %cst_16 = arith.constant dense<0.000000e+00> : vector<256xf32>
    %52 = vector.multi_reduction <add>, %51, %cst_16 [0] : vector<4x256xf32> to vector<256xf32>
    %53 = vector.shape_cast %52 : vector<256xf32> to vector<1x256xf32>
    %c256_i32 = arith.constant 256 : i32
    %54 = arith.muli %4, %c256_i32 : i32
    %55 = tpu.iota {dimensions = array<i32: 1>} : vector<1x256xi32>
    %56 = vector.broadcast %54 : i32 to vector<1x256xi32>
    %57 = arith.addi %56, %55 : vector<1x256xi32>
    %cst_17 = arith.constant 0x7F800000 : f32
    %58 = vector.broadcast %cst_17 : f32 to vector<1x256xf32>
    %59 = arith.cmpf one, %8, %58 : vector<1x256xf32>
    %c256_i32_18 = arith.constant 256 : i32
    %60 = vector.broadcast %c256_i32_18 : i32 to vector<1x256xi32>
    %61 = arith.cmpi slt, %57, %60 : vector<1x256xi32>
    %62 = arith.andi %59, %61 : vector<1x256xi1>
    %c1_i32_19 = arith.constant 1 : i32
    %63 = arith.cmpi slt, %4, %c1_i32_19 : i32
    %64 = vector.broadcast %63 : i1 to vector<1x256xi1>
    %65 = arith.andi %62, %64 : vector<1x256xi1>
    %cst_20 = arith.constant 1.000000e+00 : f32
    %66 = vector.broadcast %cst_20 : f32 to vector<1x256xf32>
    %67 = arith.select %65, %50, %66 : vector<1x256xi1>, vector<1x256xf32>
    %68 = arith.divf %53, %67 : vector<1x256xf32>
    %69 = arith.subf %16, %68 : vector<1x256xf32>
    %c0_21 = arith.constant 0 : index
    %c0_22 = arith.constant 0 : index
    %c0_23 = arith.constant 0 : index
    %70 = vector.load %arg5[%c0_21, %c0_22, %c0_23] : memref<1x1x256xf32, #tpu.memory_space<vmem>>, vector<1x1x256xf32>
    %71 = vector.shape_cast %70 : vector<1x1x256xf32> to vector<1x256xf32>
    %cst_24 = arith.constant 0.000000e+00 : f32
    %72 = vector.broadcast %cst_24 : f32 to vector<1x256xf32>
    %73 = arith.select %65, %69, %72 : vector<1x256xi1>, vector<1x256xf32>
    %74 = arith.addf %71, %73 : vector<1x256xf32>
    %c0_25 = arith.constant 0 : index
    %c0_26 = arith.constant 0 : index
    %c0_27 = arith.constant 0 : index
    %75 = vector.load %arg5[%c0_25, %c0_26, %c0_27] : memref<1x1x256xf32, #tpu.memory_space<vmem>>, vector<1x1x256xf32>
    %76 = vector.shape_cast %75 : vector<1x1x256xf32> to vector<1x256xf32>
    %77 = vector.shape_cast %74 : vector<1x256xf32> to vector<1x1x256xf32>
    tpu.vector_store %arg5[%c0_25, %c0_26, %c0_27], %77 {strides = array<i32>} : memref<1x1x256xf32, #tpu.memory_space<vmem>>, vector<1x1x256xf32>,
    %c0_28 = arith.constant 0 : index
    %c0_29 = arith.constant 0 : index
    %c0_30 = arith.constant 0 : index
    %78 = vector.load %arg6[%c0_28, %c0_29, %c0_30] : memref<1x1x256xf32, #tpu.memory_space<vmem>>, vector<1x1x256xf32>
    %79 = vector.shape_cast %78 : vector<1x1x256xf32> to vector<1x256xf32>
    %80 = arith.extui %65 : vector<1x256xi1> to vector<1x256xi32>
    %81 = arith.sitofp %80 : vector<1x256xi32> to vector<1x256xf32>
    %82 = arith.addf %79, %81 : vector<1x256xf32>
    %c0_31 = arith.constant 0 : index
    %c0_32 = arith.constant 0 : index
    %c0_33 = arith.constant 0 : index
    %83 = vector.load %arg6[%c0_31, %c0_32, %c0_33] : memref<1x1x256xf32, #tpu.memory_space<vmem>>, vector<1x1x256xf32>
    %84 = vector.shape_cast %83 : vector<1x1x256xf32> to vector<1x256xf32>
    %85 = vector.shape_cast %82 : vector<1x256xf32> to vector<1x1x256xf32>
    tpu.vector_store %arg6[%c0_31, %c0_32, %c0_33], %85 {strides = array<i32>} : memref<1x1x256xf32, #tpu.memory_space<vmem>>, vector<1x1x256xf32>,
    return
  }
  func.func @transform_0(%arg0: i32, %arg1: i32, %arg2: i32) -> (i32, i32, i32) {
    %c1_i32 = arith.constant 1 : i32
    %0 = arith.muli %arg1, %c1_i32 : i32
    %1 = arith.addi %0, %arg2 : i32
    %c0_i32 = arith.constant 0 : i32
    %2 = arith.minsi %1, %c0_i32 : i32
    %c0_i32_0 = arith.constant 0 : i32
    %c0_i32_1 = arith.constant 0 : i32
    return %arg0, %c0_i32_0, %2 : i32, i32, i32
  }
  func.func @transform_1(%arg0: i32, %arg1: i32, %arg2: i32) -> (i32, i32, i32) {
    %c1_i32 = arith.constant 1 : i32
    %0 = arith.muli %arg1, %c1_i32 : i32
    %1 = arith.addi %0, %arg2 : i32
    %c0_i32 = arith.constant 0 : i32
    %2 = arith.minsi %1, %c0_i32 : i32
    %c0_i32_0 = arith.constant 0 : i32
    %c0_i32_1 = arith.constant 0 : i32
    return %arg0, %c0_i32_0, %2 : i32, i32, i32
  }
  func.func @transform_2(%arg0: i32, %arg1: i32, %arg2: i32) -> (i32, i32, i32) {
    %c0_i32 = arith.constant 0 : i32
    %c0_i32_0 = arith.constant 0 : i32
    return %arg0, %arg1, %c0_i32 : i32, i32, i32
  }
  func.func @transform_3(%arg0: i32, %arg1: i32, %arg2: i32) -> (i32, i32, i32) {
    %c0_i32 = arith.constant 0 : i32
    %c0_i32_0 = arith.constant 0 : i32
    return %arg0, %arg1, %c0_i32 : i32, i32, i32
  }
}

</mosaic_0001>

<bundles_post_ra>
// kernel: tpu_custom_call.1
= control target key start
LH: loop header
LB: loop body
LE: loop exit
PB: predicated region body
PF: predicated region fallthrough
CT: control target
= control target key end

     0   :  { %9 = vsyncpa [#allocation3], 0  ;;  %s1387_s0 = inlined_call_operand.hbm [shape: f32[2,4,256], index: 0, kind: input, shape index: {}]   ;;  %s1388_s1 = inlined_call_operand.hbm [shape: f32[2,1,256], index: 1, kind: input, shape index: {}]   ;;  %s1389_s2 = inlined_call_operand.hbm [shape: f32[2,1,256], index: 2, kind: output, shape index: {0}]   ;;  %s1390_s3 = inlined_call_operand.hbm [shape: f32[2,1,256], index: 3, kind: output, shape index: {1}]  }
   0x1   :  { %11 = vsyncpa [#allocation3 + $0x1], 0 }
   0x2   :  { %12 = vsyncpa [#allocation6], 0 }
   0x3   :  { %14 = vsyncpa [#allocation6 + $0x1], 0 }
   0x4   :  { %15 = vsyncpa [#allocation4], 0 }
   0x5   :  { %17 = vsyncpa [#allocation4 + $0x1], 0 }
   0x6   :  { %18 = vsyncpa [#allocation9], 0 }
   0x7   :  { %20 = vsyncpa [#allocation9 + $0x1], 0  ;;  %s1058_s12 = smov 0   ;;  %s1060_s13 = smov 0  }
   0x8   :  { %s1062_s14 = smov 0   ;;  %s1064_s15 = smov 0  }
   0x9   :  { %s1066_s16 = smov 0   ;;  %s1068_s17 = smov 0  }
   0xa LB: > { %s729_s18 = sadd.s32 4294967295, %s1029_s17   ;;  %s730_s19 = sadd.s32 4294967294, %s1029_s17   ;;  %s1029_s17 = sphi %s1068_s17, %s26_s17   ;;  %s1025_s16 = sphi %s1066_s16, %s1414_s16   ;;  %s1021_s15 = sphi %s1064_s15, %s1413_s15   ;;  %s1017_s14 = sphi %s1062_s14, %s1412_s14   ;;  %s1013_s13 = sphi %s1060_s13, %s1411_s13   ;;  %s1009_s12 = sphi %s1058_s12, %s1410_s12  }
   0xb   : > { %s45_s20 = sadd.s32 1, %s1025_s16  ;;  %s60_s21 = sadd.s32 1, %s1017_s14 }
   0xc   : > { %p47_p0 = scmp.ge.s32.totalorder %s45_s20, 2  ;;  %p67_p1 = scmp.ne.s32.totalorder %s1017_s14, %s1013_s13 }
   0xd   : > { %p68_p2 = scmp.eq.s32.totalorder %s1029_s17, 0  ;;  %p73_p3 = scmp.ne.s32.totalorder %s1013_s13, %s1009_s12 }
   0xe   : > { %s1416_s20 = smov (%p47_p0, %s45_s20), 0  ;;  %p74_p5 = scmp.eq.s32.totalorder %s729_s18, 0 }
   0xf   : > { %p1099_p4 = por %p68_p2, %p67_p1  ;;  %s55_s23 = ssub.s32 %s1025_s16, %s1416_s20 }
  0x10   : > { %p133_p6 = scmp.eq.s32.totalorder %s729_s18, 1  ;;  %p58_p7 = scmp.eq.s32.totalorder %s55_s23, 0 }
  0x11   : > { %p1105_p8 = por %p74_p5, %p73_p3  ;;  %p139_p10 = scmp.eq.s32.totalorder %s730_s19, 1 }
  0x12   : > { %p1109_p9 = por %p133_p6, %p67_p1  ;;  %p779_p13 = scmp.lt.s32.totalorder %s1029_s17, 2 }
  0x13   : > { %s1394_s24 = scalar_select %p1105_p8, 1, 0 }
  0x14   : > { %s1395_s25 = scalar_select %p1109_p9, 1, 0 }
  0x15   : > { %s1114_s26 = scalar_select %p58_p7, %s1017_s14, %s60_s21  }
  0x16   : > { %p1116_p11 = por %p139_p10, %p73_p3  ;;  %s1123_s28 = sand.u32 1, %s1017_s14  }
  0x17   : > { %s733_s29 = sshll.u32 %s1123_s28, 3  ;;  %s753_s30 = sshll.u32 %s1025_s16, 7 }
  0x18   : > { %s1396_s27 = scalar_select %p1116_p11, 1, 0 }
  0x19   : > { %s1130_s6 = scalar_lea.hbm %s1387_s0, %s753_s30  ;;  %s191_s7 = scalar_lea.vmem [#allocation2], %s733_s29 }
  0x1a   : > { %s204_s8 = sshll.u32 %s191_s7, 4  ;;  %p1136_p0 = pnand %p779_p13, %p1099_p4  ;;  %s1132_s8 = int_to_ptr.vmem [resolvable:$true] %s204_s8 }
  0x1b   : > { %s188_s10 = scalar_lea.sflag [#allocation3], %s1123_s28  ;;  %s851_s11 = scalar_lea.hbm %s1130_s6, 128 }
  0x1c   : > { %p852_p3 = scmp.ne.s32.totalorder %s1130_s6, %s851_s11  ;;  %p853_p5 = pneg %p1136_p0 }
  0x1d   : > { %s856_s21 = scalar_lea.hbm %s1387_s0, 256  ;;  %p857_p4 = scmp.lt.u32.totalorder %s1130_s6, %s1387_s0 }
  0x1e   : > { %p854_p6 = pnand %p853_p5, %p852_p3  ;;  %p858_p10 = scmp.lt.u32.totalorder %s856_s21, %s851_s11 }
  0x1f   : > { %p860_p12 = scmp.lt.u32.totalorder %s851_s11, %s1130_s6 }
  0x20   : > { %p855_p7 = pneg %p854_p6  ;;  %p859_p13 = por %p858_p10, %p857_p4 }
  0x22   : > { %p861_p1 = por %p860_p12, %p859_p13 }
  0x24   : > { %p862_p2 = pnand %p861_p1, %p855_p7 }
  0x26   : > { %865 = shalt.err (!%p862_p2)
}
  0x27   : > { %s866_s29 = scalar_lea.vmem %s1132_s8, 128  ;;  %s1031_s30 = smov [#allocation2]  }
  0x28   : > { %p867_p3 = scmp.ne.s32.totalorder %s1132_s8, %s866_s29  ;;  %s871_s4 = sshll.u32 %s1031_s30, 4  ;;  %s872_s4 = int_to_ptr.vmem [resolvable:$false] %s871_s4 }
  0x29   : > { %s873_s5 = scalar_lea.vmem %s872_s4, 256  ;;  %p874_p9 = scmp.lt.s32.totalorder %s1132_s8, %s872_s4 }
  0x2a   : > { %p869_p6 = pnand %p867_p3, %p853_p5  ;;  %p875_p4 = scmp.lt.s32.totalorder %s873_s5, %s866_s29 }
  0x2c   : > { %p870_p11 = pneg %p869_p6  ;;  %p876_p10 = por %p875_p4, %p874_p9 }
  0x2e   : > { %p877_p12 = pnand %p876_p10, %p870_p11 }
  0x30   : > { %880 = shalt.err (!%p877_p12)
}
  0x31   : > { %768 = dma.hbm_to_vmem [thread:$0]  (!%p1136_p0), %s1130_s6, 128, %s1132_s8, %s188_s10  }
  0x32   : > { %p1398_p1 = scmp.lt.s32.totalorder %s1029_s17, 3  ;;  %p1399_p2 = scmp.ge.s32.totalorder %s1029_s17, 1 }
  0x33   : > { %s736_s11 = sshll.u32 %s1123_s28, 1  ;;  %s754_s18 = sshll.u32 %s1025_s16, 5 }
  0x34   : > { %p1172_p7 = pnand %p1399_p2, %p1398_p1  ;;  %s1181_s22 = scalar_lea.hbm %s1388_s1, %s754_s18 }
  0x35   : > { %s215_s23 = scalar_lea.vmem [#allocation5], %s736_s11  ;;  %s212_s6 = scalar_lea.sflag [#allocation6], %s1123_s28 }
  0x36   : > { %s1400_s7 = scalar_select %p1172_p7, 1, 0 }
  0x37   : > { %s228_s29 = sshll.u32 %s215_s23, 4  ;;  %s881_s8 = scalar_lea.hbm %s1181_s22, 32  ;;  %s229_s29 = int_to_ptr.vmem [resolvable:$true] %s228_s29 }
  0x38   : > { %p882_p9 = scmp.ne.s32.totalorder %s1181_s22, %s881_s8  ;;  %s886_s4 = scalar_lea.hbm %s1388_s1, 64 }
  0x39   : > { %p887_p3 = scmp.lt.u32.totalorder %s1181_s22, %s1388_s1  ;;  %p888_p6 = scmp.lt.u32.totalorder %s886_s4, %s881_s8 }
  0x3a   : > { %p884_p11 = pnand %p882_p9, %p853_p5  ;;  %p890_p10 = scmp.lt.u32.totalorder %s881_s8, %s1181_s22 }
  0x3b   : > { %p889_p4 = por %p888_p6, %p887_p3 }
  0x3c   : > { %p885_p13 = pneg %p884_p11 }
  0x3d   : > { %p891_p12 = por %p890_p10, %p889_p4 }
  0x3f   : > { %p892_p1 = pnand %p891_p12, %p885_p13 }
  0x41   : > { %895 = shalt.err (!%p892_p1)
}
  0x42   : > { %s896_s28 = scalar_lea.vmem %s229_s29, 32  ;;  %s1032_s11 = smov [#allocation5]  }
  0x43   : > { %p897_p2 = scmp.ne.s32.totalorder %s229_s29, %s896_s28  ;;  %s901_s19 = sshll.u32 %s1032_s11, 4  ;;  %s902_s19 = int_to_ptr.vmem [resolvable:$false] %s901_s19 }
  0x44   : > { %s903_s21 = scalar_lea.vmem %s902_s19, 64  ;;  %p904_p8 = scmp.lt.s32.totalorder %s229_s29, %s902_s19 }
  0x45   : > { %p899_p9 = pnand %p897_p2, %p853_p5  ;;  %p905_p7 = scmp.lt.s32.totalorder %s903_s21, %s896_s28 }
  0x47   : > { %p900_p11 = pneg %p899_p9  ;;  %p906_p3 = por %p905_p7, %p904_p8 }
  0x49   : > { %p907_p6 = pnand %p906_p3, %p900_p11 }
  0x4b   : > { %910 = shalt.err (!%p907_p6)
}
  0x4c   : > { %771 = dma.hbm_to_vmem [thread:$0]  (!%p1136_p0), %s1181_s22, 32, %s229_s29, %s212_s6  }
  0x4d   : > { %p1401_p13 = scmp.ne.s32.totalorder %s1400_s7, 0 }
  0x4e   : > { %s1206_s23 = sand.u32 (!%p1401_p13), 1, %s1013_s13   ;;  %p1402_p5 = scmp.ne.s32.totalorder (!%p1401_p13), %s1394_s24, 0 }
  0x4f   : > { %237 = sbr.rel (%p1401_p13) target bundleno = 196 (0xc4), region = 28  ;;  %s740_s8 = sshll.u32 (!%p1401_p13), %s1206_s23, 3 }
  0x50   : > { %s240_s10 = scalar_lea.sflag (!%p1401_p13), [#allocation3], %s1206_s23  ;;  %s243_s30 = scalar_lea.vmem (!%p1401_p13), [#allocation2], %s740_s8 }
  0x56   : > { %992 = dma.done.wait (%p1402_p5), %s240_s10, 128  }
  0x57   : > { %994 = vsyncadd (%p1402_p5), %s240_s10, 4294967168  ;;  %s741_s9 = sshll.u32 %s1206_s23, 1  ;;  %s249_s7 = scalar_lea.sflag [#allocation6], %s1206_s23 }
  0x58   : > { %s252_s22 = scalar_lea.vmem [#allocation5], %s741_s9 }
  0x59   : > { %996 = dma.done.wait (%p1402_p5), %s249_s7, 32  }
  0x5a   : > { %998 = vsyncadd (%p1402_p5), %s249_s7, 4294967264  ;;  %v297_v0 = vlaneseq  ;;  %v1033_v3 = vmov 1966171168   ;;  %s1224_s29 = scalar_lea.vmem [#allocation7], %s741_s9  ;;  %v1034_v5 = vmov 0.0   ;;  %s1229_s6 = scalar_lea.vmem [#allocation8], %s741_s9 }
  0x5b   : > { %v456_v4 = vunpack.c.l.s4 %v1033_v3  ;;  %vm309_vm1 = vcmask 1043456   ;;  %v1236_v9 = vld [vmem:[%s243_s30] sm:$0xff]  ;;  %v1238_v10 = vld [vmem:[%s252_s22] sm:$0x3]  ;;  %v1035_v11 = vmov 1   ;;  %s755_s24 = sshll.u32 %s1021_s15, 5 }
  0x5c   : > { %vm1220_vm0 = vcmp.lt.s32.totalorder %v297_v0, 256  ;;  %v353_v2 = vshrl.u32 %v297_v0, 7  ;;  %v454_v12 = vcombine.low %v1035_v11, %v1035_v11  ;;  %v307_v13 = vcombine.high %v1236_v9, %v1236_v9  ;;  %s581_s4 = sshll.u32 %s1229_s6, 4  ;;  %s1272_s28 = scalar_lea.hbm %s1390_s3, %s755_s24  ;;  %s1274_s4 = int_to_ptr.vmem [resolvable:$true] %s581_s4 }
  0x5d   : > { %301 = vst.msk [vmem:[%s1224_s29] sm:$0x3] %vm1220_vm0, %v1034_v5  ;;  %302 = vst.msk [vmem:[%s1229_s6] sm:$0x3] %vm1220_vm0, %v1034_v5  ;;  %v457_v7 = vunpack.c.0.s8 %v456_v4  ;;  %v310_v14 = vsel %vm309_vm1, %v1236_v9, -inf  ;;  %v361_v18 = vsub.f32 0.0, %v1238_v10 }
  0x5e   : > { %v354_v6 = vcvt.s32.f32 %v353_v2  ;;  %v311_v17 = vrot.slane %v310_v14, 4  ;;  %v364_v19 = vmul.f32 1.442695, %v1238_v10  ;;  %v317_v21 = vsel %vm309_vm1, %v307_v13, -inf  ;;  %s549_s11 = scalar_lea.sflag [#allocation9], %s1206_s23  ;;  %s911_s19 = scalar_lea.vmem %s1274_s4, 32 }
  0x5f   : > { %v1248_v20 = vsub.s32 %v457_v7, %v353_v2  ;;  %v318_v24 = vrot.slane %v317_v21, 4  ;;  %v362_v25 = vmul.f32 1.442695, %v361_v18  ;;  %vm449_vm2 = vcmp.ne.f32.partialorder %v1238_v10, inf  ;;  %p912_p8 = scmp.ne.s32.totalorder %s1274_s4, %s911_s19  ;;  %p1407_p0 = scmp.ne.s32.totalorder %s1395_s25, 0 }
  0x60   : > { %v1234_v8 = vmul.f32 2.0, %v354_v6  ;;  %v312_v23 = vmax.f32 %v310_v14, %v311_v17  ;;  %v1254_v32 = vsub.s32 0, %v353_v2  ;;  %v1257_v35 = vsub.s32 1, %v353_v2  ;;  %s1036_s21 = smov [#allocation8]  }
  0x61   : > { %v319_v27 = vmax.f32 %v317_v21, %v318_v24  ;;  %v461_v28 = vrot.slane %v454_v12, %v1248_v20  ;;  %p913_p7 = pnand %p912_p8, %p1407_p0  ;;  %s915_s8 = sshll.u32 %s1036_s21, 4  ;;  %s916_s8 = int_to_ptr.vmem [resolvable:$false] %s915_s8 }
  0x62   : > { %v356_v15 = vmul.f32 1.442695, %v1234_v8  ;;  %v358_v16 = vsub.f32 0.0, %v1234_v8  ;;  %v313_v26 = vrot.slane %v312_v23, 2  ;;  %v370_v45 = vrot.slane %v1238_v10, %v1254_v32  ;;  %s917_s10 = scalar_lea.vmem %s916_s8, 64  ;;  %p918_p10 = scmp.lt.s32.totalorder %s1274_s4, %s916_s8 }
  0x63   : > { %v320_v30 = vrot.slane %v319_v27, 2  ;;  %v468_v31 = vrot.slane %v461_v28, %v1248_v20  ;;  %v374_v46 = vrot.slane %v1238_v10, %v1257_v35  ;;  %p914_p4 = pneg %p913_p7  ;;  %p919_p12 = scmp.lt.s32.totalorder %s917_s10, %s911_s19 }
  0x64   : > { %833 = vpow2.f32 %v356_v15  ;;  %v359_v22 = vmul.f32 1.442695, %v358_v16  ;;  %v314_v29 = vmax.f32 %v312_v23, %v313_v26  ;;  %v538_v36 = vld [vmem:[%s1229_s6] sm:$0x3] }
  0x65   : > { %835 = vpow2.f32 %v364_v19  ;;  %v321_v34 = vmax.f32 %v319_v27, %v320_v30  ;;  %vm469_vm3 = vcmp.ne.s32.totalorder %v468_v31, 0  ;;  %p920_p1 = por %p919_p12, %p918_p10 }
  0x66   : > { %837 = vpow2.f32 %v359_v22  ;;  %v315_v33 = vrot.slane %v314_v29, 1  ;;  %vm1261_vm4 = vmand %vm449_vm2, %vm469_vm3 }
  0x67   : > { %839 = vpow2.f32 %v362_v25  ;;  %v322_v39 = vrot.slane %v321_v34, 1  ;;  %v744_v40 = vsel %vm1261_vm4, 1.0, %v1034_v5  ;;  %p921_p2 = pnand %p920_p1, %p914_p4 }
  0x68   : > { %v316_v38 = vmax.f32 %v314_v29, %v315_v33  ;;  %v541_v42 = vadd.f32 %v744_v40, %v538_v36 }
  0x69   : > { %v323_v44 = vmax.f32 %v321_v34, %v322_v39 }
  0x6a   : > { %542 = vst.msk [vmem:[%s1229_s6] sm:$0x3] %vm1220_vm0, %v541_v42 }
  0x6b   : > { %v326_v51 = vcombine.low %v316_v38, %v323_v44 }
  0x6e   : > { %v834_v41 = vpop.eup %833 }
  0x6f   : > { %v836_v43 = vpop.eup %835 }
  0x70   : > { %v838_v47 = vpop.eup %837  ;;  %v396_v48 = vrot.slane %v836_v43, %v1254_v32  ;;  %v400_v49 = vrot.slane %v836_v43, %v1257_v35 }
  0x71   : > { %v840_v50 = vpop.eup %839 }
  0x72   : > { %924 = shalt.err (!%p921_p2)
}
  0x73   : > { %s925_s30 = scalar_lea.hbm %s1272_s28, 32  ;;  %s929_s22 = scalar_lea.hbm %s1390_s3, 64 }
  0x74   : > { %p926_p9 = scmp.ne.s32.totalorder %s1272_s28, %s925_s30  ;;  %p930_p6 = scmp.lt.u32.totalorder %s1272_s28, %s1390_s3 }
  0x75   : > { %p931_p13 = scmp.lt.u32.totalorder %s929_s22, %s925_s30  ;;  %p933_p8 = scmp.lt.u32.totalorder %s925_s30, %s1272_s28 }
  0x76   : > { %p927_p11 = pnand %p926_p9, %p1407_p0 }
  0x77   : > { %p932_p5 = por %p931_p13, %p930_p6 }
  0x78   : > { %p928_p3 = pneg %p927_p11 }
  0x79   : > { %p934_p7 = por %p933_p8, %p932_p5 }
  0x7b   : > { %p935_p4 = pnand %p934_p7, %p928_p3 }
  0x7d   : > { %938 = shalt.err (!%p935_p4)
}
  0x7e   : > { %762 = dma.vmem_to_hbm [thread:$0]  (%p1407_p0), %s1274_s4, 32, %s1272_s28, %s549_s11   ;;  %v383_v52 = vrot.slane %v840_v50, %v1254_v32  ;;  %v387_v53 = vrot.slane %v840_v50, %v1257_v35  ;;  %v403_v54 = vmul.f32 %v838_v47, %v396_v48  ;;  %v404_v55 = vmul.f32 %v838_v47, %v400_v49 }
  0x7f   : > { %v328_v56 = vsub.f32 %v1236_v9, %v326_v51  ;;  %vm377_vm5 = vcmp.le.f32.partialorder %v1234_v8, %v370_v45  ;;  %vm378_vm6 = vcmp.le.f32.partialorder %v1234_v8, %v374_v46  ;;  %s565_s4 = sshll.u32 %s1224_s29, 4  ;;  %s1335_s11 = scalar_lea.hbm %s1389_s2, %s755_s24  ;;  %s1337_s4 = int_to_ptr.vmem [resolvable:$true] %s565_s4 }
  0x80   : > { %v390_v57 = vmul.f32 %v834_v41, %v383_v52  ;;  %v391_v58 = vmul.f32 %v834_v41, %v387_v53  ;;  %s544_s19 = scalar_lea.sflag [#allocation4], %s1206_s23  ;;  %s939_s21 = scalar_lea.vmem %s1337_s4, 32 }
  0x81   : > { %v329_v59 = vmul.f32 1.442695, %v328_v56  ;;  %v424_v3 = vcombine.high %v328_v56, %v328_v56  ;;  %p940_p10 = scmp.ne.s32.totalorder %s1337_s4, %s939_s21  ;;  %s1037_s15 = smov [#allocation7]  }
  0x82   : > { %v405_v60 = vsel %vm377_vm5, %v390_v57, %v403_v54  ;;  %v406_v61 = vsel %vm378_vm6, %v391_v58, %v404_v55  ;;  %s943_s8 = sshll.u32 %s1037_s15, 4  ;;  %s944_s8 = int_to_ptr.vmem [resolvable:$false] %s943_s8 }
  0x83   : > { %841 = vpow2.f32 %v329_v59  ;;  %v407_v62 = vmul.f32 0.5, %v405_v60  ;;  %v408_v63 = vmul.f32 0.5, %v406_v61  ;;  %p941_p12 = pnand %p940_p10, %p1407_p0  ;;  %s945_s10 = scalar_lea.vmem %s944_s8, 64 }
  0x84   : > { %p946_p2 = scmp.lt.s32.totalorder %s1337_s4, %s944_s8  ;;  %p947_p9 = scmp.lt.s32.totalorder %s945_s10, %s939_s21 }
  0x85   : > { %v409_v0 = vsel %vm309_vm1, %v407_v62, 0.0  ;;  %v416_v2 = vsel %vm309_vm1, %v408_v63, 0.0  ;;  %v426_v9 = vmul.f32 %v407_v62, %v328_v56  ;;  %v427_v10 = vmul.f32 %v424_v3, %v408_v63  ;;  %p942_p1 = pneg %p941_p12 }
  0x86   : > { %v410_v4 = vrot.slane %v409_v0, 4  ;;  %v417_v5 = vrot.slane %v416_v2, 4  ;;  %p948_p11 = por %p947_p9, %p946_p2 }
  0x87   : > { %v428_v14 = vsel %vm309_vm1, %v426_v9, 0.0  ;;  %v435_v16 = vsel %vm309_vm1, %v427_v10, 0.0 }
  0x88   : > { %v411_v6 = vadd.f32 %v410_v4, %v409_v0  ;;  %v418_v7 = vadd.f32 %v417_v5, %v416_v2  ;;  %v429_v23 = vrot.slane %v428_v14, 4  ;;  %v436_v29 = vrot.slane %v435_v16, 4  ;;  %v512_v5 = vld [vmem:[%s1224_s29] sm:$0x3]  ;;  %p949_p3 = pnand %p948_p11, %p942_p1 }
  0x8a   : > { %v412_v8 = vrot.slane %v411_v6, 2  ;;  %v419_v11 = vrot.slane %v418_v7, 2  ;;  %v430_v34 = vadd.f32 %v429_v23, %v428_v14  ;;  %v437_v40 = vadd.f32 %v436_v29, %v435_v16 }
  0x8c   : > { %v413_v12 = vadd.f32 %v412_v8, %v411_v6  ;;  %v420_v13 = vadd.f32 %v419_v11, %v418_v7  ;;  %v431_v44 = vrot.slane %v430_v34, 2  ;;  %v438_v48 = vrot.slane %v437_v40, 2 }
  0x8d   : > { %v842_v15 = vpop.eup %841 }
  0x8e   : > { %v332_v17 = vcombine.high %v842_v15, %v842_v15  ;;  %v334_v18 = vsel %vm309_vm1, %v842_v15, 0.0  ;;  %v414_v19 = vrot.slane %v413_v12, 1  ;;  %v421_v21 = vrot.slane %v420_v13, 1 }
  0x8f   : > { %v335_v22 = vrot.slane %v334_v18, 4  ;;  %v432_v52 = vadd.f32 %v431_v44, %v430_v34  ;;  %v439_v53 = vadd.f32 %v438_v48, %v437_v40 }
  0x90   : > { %v341_v24 = vsel %vm309_vm1, %v332_v17, 0.0  ;;  %v415_v25 = vadd.f32 %v414_v19, %v413_v12  ;;  %v422_v26 = vadd.f32 %v421_v21, %v420_v13 }
  0x91   : > { %v336_v27 = vadd.f32 %v335_v22, %v334_v18  ;;  %v342_v28 = vrot.slane %v341_v24, 4  ;;  %v433_v54 = vrot.slane %v432_v52, 1  ;;  %v440_v55 = vrot.slane %v439_v53, 1 }
  0x92   : > { %v478_v30 = vcombine.low %v415_v25, %v422_v26 }
  0x93   : > { %v337_v31 = vrot.slane %v336_v27, 2  ;;  %v343_v33 = vadd.f32 %v342_v28, %v341_v24  ;;  %v434_v56 = vadd.f32 %v433_v54, %v432_v52  ;;  %v441_v58 = vadd.f32 %v440_v55, %v439_v53 }
  0x94   : > { %v485_v36 = vrot.slane %v478_v30, %v1248_v20 }
  0x95   : > { %v338_v38 = vadd.f32 %v337_v31, %v336_v27  ;;  %v344_v39 = vrot.slane %v343_v33, 2 }
  0x96   : > { %v492_v41 = vrot.slane %v485_v36, %v1248_v20 }
  0x97   : > { %v339_v42 = vrot.slane %v338_v38, 1  ;;  %v345_v43 = vadd.f32 %v344_v39, %v343_v33 }
  0x98   : > { %v494_v45 = vsel %vm1261_vm4, %v492_v41, 1.0 }
  0x99   : > { %v340_v46 = vadd.f32 %v339_v42, %v338_v38  ;;  %v346_v47 = vrot.slane %v345_v43, 1  ;;  %v499_v49 = vrot.slane %v494_v45, %v1254_v32  ;;  %v503_v50 = vrot.slane %v494_v45, %v1257_v35 }
  0x9b   : > { %v347_v51 = vadd.f32 %v346_v47, %v345_v43  ;;  %843 = vlog2.f32 %v340_v46 }
  0x9c   : > { %845 = vrcp.f32 %v499_v49 }
  0x9d   : > { %847 = vlog2.f32 %v347_v51 }
  0x9e   : > { %849 = vrcp.f32 %v503_v50 }
  0xa5   : > { %v844_v57 = vpop.eup %843 }
  0xa6   : > { %v846_v59 = vpop.eup %845  ;;  %v349_v60 = vmul.f32 0.6931472, %v844_v57 }
  0xa7   : > { %v848_v32 = vpop.eup %847  ;;  %v507_v35 = vmul.f32 %v846_v59, %v434_v56 }
  0xa8   : > { %v850_v61 = vpop.eup %849  ;;  %v351_v62 = vmul.f32 0.6931472, %v848_v32 }
  0xa9   : > { %v509_v63 = vmul.f32 %v850_v61, %v441_v58  ;;  %v510_v0 = vsub.f32 %v349_v60, %v507_v35 }
  0xab   : > { %v511_v2 = vsub.f32 %v351_v62, %v509_v63 }
  0xad   : > { %v515_v3 = vcombine.low %v510_v0, %v511_v2 }
  0xaf   : > { %v522_v4 = vrot.slane %v515_v3, %v1248_v20 }
  0xb1   : > { %v529_v6 = vrot.slane %v522_v4, %v1248_v20 }
  0xb3   : > { %v531_v7 = vsel %vm1261_vm4, %v529_v6, 0.0 }
  0xb4   : > { %v532_v9 = vadd.f32 %v531_v7, %v512_v5 }
  0xb6   : > { %537 = vst.msk [vmem:[%s1224_s29] sm:$0x3] %vm1220_vm0, %v532_v9 }
  0xb7   : > { %952 = shalt.err (!%p949_p3)
}
  0xb8   : > { %s953_s23 = scalar_lea.hbm %s1335_s11, 32  ;;  %s957_s30 = scalar_lea.hbm %s1389_s2, 64 }
  0xb9   : > { %p954_p6 = scmp.ne.s32.totalorder %s1335_s11, %s953_s23  ;;  %p958_p8 = scmp.lt.u32.totalorder %s1335_s11, %s1389_s2 }
  0xba   : > { %p959_p7 = scmp.lt.u32.totalorder %s957_s30, %s953_s23  ;;  %p961_p10 = scmp.lt.u32.totalorder %s953_s23, %s1335_s11 }
  0xbb   : > { %p955_p13 = pnand %p954_p6, %p1407_p0 }
  0xbc   : > { %p960_p4 = por %p959_p7, %p958_p8 }
  0xbd   : > { %p956_p5 = pneg %p955_p13 }
  0xbe   : > { %p962_p12 = por %p961_p10, %p960_p4 }
  0xc0   : > { %p963_p1 = pnand %p962_p12, %p956_p5 }
  0xc2   : > { %966 = shalt.err (!%p963_p1)
}
  0xc3   : > { %761 = dma.vmem_to_hbm [thread:$0]  (%p1407_p0), %s1337_s4, 32, %s1335_s11, %s544_s19  }
  0xc4 PF: > { %s593_s22 = sand.u32 1, %s1009_s12   ;;  %p1408_p2 = scmp.ne.s32.totalorder %s1396_s27, 0 }
  0xc5   : > { %p1409_p9 = scmp.ge.s32.totalorder %s1029_s17, 2  ;;  %s594_s6 = scalar_lea.sflag [#allocation4], %s593_s22 }
  0xc7   : > { %p773_p11 = pnand %p1409_p9, %p1408_p2 }
  0xc9   : > { %1000 = dma.done.wait (!%p773_p11), %s594_s6, 32  }
  0xca   : > { %1002 = vsyncadd (!%p773_p11), %s594_s6, 4294967264  ;;  %s603_s5 = scalar_lea.sflag [#allocation9], %s593_s22 }
  0xcb   : > { %1004 = dma.done.wait (!%p773_p11), %s603_s5, 32  }
  0xcc   : > { %1006 = vsyncadd (!%p773_p11), %s603_s5, 4294967264  ;;  %s26_s17 = sadd.s32 1, %s1029_s17   ;;  %s1410_s12 = smov %s1013_s13 }
  0xcd   : > { %p23_p3 = scmp.ge.s32.totalorder %s26_s17, 4   ;;  %s1411_s13 = smov %s1017_s14 }
  0xce   : > { %s1412_s14 = smov %s1114_s26  ;;  %s1413_s15 = smov %s1025_s16 }
  0xcf   : > { %s1414_s16 = smov %s1416_s20  ;;  %25 = sbr.rel (!%p23_p3) target bundleno = 10 (0xa), region = 107 }
  0xd6   :  { %608 = vsyncpa [#allocation3], 1 }
  0xd7   :  { %610 = vsyncpa [#allocation3 + $0x1], 1 }
  0xd8   :  { %611 = vsyncpa [#allocation6], 1 }
  0xd9   :  { %613 = vsyncpa [#allocation6 + $0x1], 1 }
  0xda   :  { %614 = vsyncpa [#allocation4], 1 }
  0xdb   :  { %616 = vsyncpa [#allocation4 + $0x1], 1 }
  0xdc   :  { %617 = vsyncpa [#allocation9], 1 }
  0xdd   :  { %619 = vsyncpa [#allocation9 + $0x1], 1 }

</bundles_post_ra>
